<compile_context>
chip_gen: v7x
topology: tpu7x:2x2x1
jax: 0.10.0
libtpu: 0.0.40
codegen_flags: <defaults>
</compile_context>

<pallas_src>
import jax
import jax.numpy as jnp
from jax.experimental import pallas as pl
from jax.experimental.pallas import tpu as pltpu


def _relu_conv1x1_kernel_single(x_ref, w_ref, o_ref):
    # x_ref: (C_in, HW), w_ref: (C_out, C_in), o_ref: (C_out, HW)
    x = jnp.maximum(x_ref[...], 0.0)  # fused ReLU (value-equivalent to torch's inplace ReLU)
    o_ref[...] = jnp.dot(
        w_ref[...], x, preferred_element_type=jnp.float32
    ).astype(o_ref.dtype)


def _relu_conv1x1_kernel_batched(x_ref, w_ref, o_ref):
    # x_ref: (B_blk, C_in, HW), w_ref: (C_out, C_in), o_ref: (B_blk, C_out, HW)
    x = jnp.maximum(x_ref[...], 0.0)
    o_ref[...] = jnp.einsum(
        "oc,bcl->bol", w_ref[...], x, preferred_element_type=jnp.float32
    ).astype(o_ref.dtype)


def _pick_batch_block(n: int, max_blk: int = 8) -> int:
    """Largest divisor of n that is <= max_blk (keeps blocks exact, no ragged tail)."""
    for b in range(min(n, max_blk), 0, -1):
        if n % b == 0:
            return b
    return 1


def relu_conv1x1(x_nchw: jax.Array, weight_oi: jax.Array) -> jax.Array:
    """x_nchw: (N, C_in, H, W) f32; weight_oi: (C_out, C_in) f32 (1x1 conv, no bias)."""
    N, C_in, H, W = x_nchw.shape
    C_out = weight_oi.shape[0]
    HW = H * W
    itemsize = jnp.dtype(x_nchw.dtype).itemsize

    # NCHW -> (N, C_in, H*W): contiguous reshape, no data movement.
    x_cm = x_nchw.reshape(N, C_in, HW)

    cost = pl.CostEstimate(
        flops=2 * N * C_out * C_in * HW,
        transcendentals=0,
        bytes_accessed=itemsize * (N * C_in * HW + C_out * C_in + N * C_out * HW),
    )

    if N == 1:
        # Gridless path: whole problem (~350 KB) fits trivially in VMEM; no
        # pipeline machinery, no per-step overhead.
        out_cm = pl.pallas_call(
            _relu_conv1x1_kernel_single,
            out_shape=jax.ShapeDtypeStruct((C_out, HW), x_nchw.dtype),
            in_specs=[
                pl.BlockSpec(memory_space=pltpu.MemorySpace.VMEM),
                pl.BlockSpec(memory_space=pltpu.MemorySpace.VMEM),
            ],
            out_specs=pl.BlockSpec(memory_space=pltpu.MemorySpace.VMEM),
            cost_estimate=cost,
        )(x_cm[0], weight_oi)
        return out_cm.reshape(1, C_out, H, W)

    # N > 1: block B_blk batch elements per grid step (amortize per-step
    # overhead, larger DMAs).  Double-buffered footprint at B_blk=8 is ~2 MB,
    # comfortably inside every generation's VMEM.
    B_blk = _pick_batch_block(N, 8)
    out_cm = pl.pallas_call(
        _relu_conv1x1_kernel_batched,
        out_shape=jax.ShapeDtypeStruct((N, C_out, HW), x_nchw.dtype),
        grid=(N // B_blk,),
        in_specs=[
            # B_blk (C_in, HW) slabs per grid step.
            pl.BlockSpec((B_blk, C_in, HW), lambda n: (n, 0, 0)),
            # Weight: index_map constant in n -> stays resident in VMEM,
            # never re-DMA'd across grid steps.
            pl.BlockSpec((C_out, C_in), lambda n: (0, 0)),
        ],
        out_specs=pl.BlockSpec((B_blk, C_out, HW), lambda n: (n, 0, 0)),
        compiler_params=pltpu.CompilerParams(
            dimension_semantics=("parallel",),
        ),
        cost_estimate=cost,
    )(x_cm, weight_oi)
    return out_cm.reshape(N, C_out, H, W)


if __name__ == "__main__":
    key = jax.random.PRNGKey(0)
    kx, kw, kx2 = jax.random.split(key, 3)

    # Shapes implied by the module: x74 = randn(1, 160, 14, 14), Conv2d(160, 160, 1x1, bias=False)
    N, C_in, H, W = 1, 160, 14, 14
    C_out = 160

    x = jax.random.normal(kx, (N, C_in, H, W), dtype=jnp.float32)
    # Deterministic weight init (kaiming-uniform-like bound for a 1x1 conv).
    bound = 1.0 / jnp.sqrt(jnp.float32(C_in))
    weight = jax.random.uniform(
        kw, (C_out, C_in), minval=-bound, maxval=bound, dtype=jnp.float32
    )

    # Gridless N=1 path (the module's shape).
    out = relu_conv1x1(x, weight)
    jax.block_until_ready(out)
    ref = jnp.einsum("oc,nchw->nohw", weight, jnp.maximum(x, 0.0))
    assert out.shape == (N, C_out, H, W)
    assert jnp.allclose(out, ref, atol=1e-4, rtol=1e-4)

    # Batch-blocked N>1 path (sanity check of the grid code path).
    xb = jax.random.normal(kx2, (4, C_in, H, W), dtype=jnp.float32)
    out_b = relu_conv1x1(xb, weight)
    jax.block_until_ready(out_b)
    ref_b = jnp.einsum("oc,nchw->nohw", weight, jnp.maximum(xb, 0.0))
    assert out_b.shape == (4, C_out, H, W)
    assert jnp.allclose(out_b, ref_b, atol=1e-4, rtol=1e-4)

    print("KERNEL_OK")
</pallas_src>

<mosaic_0001>
module attributes {stable_mosaic.version = 11 : i64} {
  func.func @_relu_conv1x1_kernel_single(%arg0: memref<160x196xf32, #tpu.memory_space<vmem>>, %arg1: memref<160x160xf32, #tpu.memory_space<vmem>>, %arg2: memref<160x196xf32, #tpu.memory_space<vmem>>) attributes {dimension_semantics = [], scalar_prefetch = 0 : i64, scratch_operands = 0 : i64, tpu.core_type = #tpu.core_type<tc>} {
    %c0 = arith.constant 0 : index
    %c0_0 = arith.constant 0 : index
    %0 = vector.load %arg0[%c0, %c0_0] : memref<160x196xf32, #tpu.memory_space<vmem>>, vector<160x196xf32>
    %cst = arith.constant 0.000000e+00 : f32
    %1 = vector.broadcast %cst : f32 to vector<160x196xf32>
    %2 = arith.maximumf %0, %1 : vector<160x196xf32>
    %c0_1 = arith.constant 0 : index
    %c0_2 = arith.constant 0 : index
    %3 = vector.load %arg1[%c0_1, %c0_2] : memref<160x160xf32, #tpu.memory_space<vmem>>, vector<160x160xf32>
    %cst_3 = arith.constant dense<0.000000e+00> : vector<160x196xf32>
    %4 = tpu.matmul %3, %2, %cst_3 {dimension_numbers = #tpu.dot_dimension_numbers<[1], [0], [0], [1], [0, 0, 1, 1], [], []>} : vector<160x160xf32>, vector<160x196xf32>, vector<160x196xf32> -> vector<160x196xf32>
    %c0_4 = arith.constant 0 : index
    %c0_5 = arith.constant 0 : index
    %5 = vector.load %arg2[%c0_4, %c0_5] : memref<160x196xf32, #tpu.memory_space<vmem>>, vector<160x196xf32>
    tpu.vector_store %arg2[%c0_4, %c0_5], %4 {strides = array<i32>} : memref<160x196xf32, #tpu.memory_space<vmem>>, vector<160x196xf32>,
    return
  }
}

</mosaic_0001>

<bundles_post_ra>
// kernel: tpu_custom_call.1
= control target key start
LH: loop header
LB: loop body
LE: loop exit
PB: predicated region body
PF: predicated region fallthrough
CT: control target
= control target key end

     0   :  { %7 = vsyncpa [#allocation3], 0  ;;  %s727_s0 = inlined_call_operand.hbm [shape: f32[160,196], index: 0, kind: input, shape index: {}]   ;;  %s728_s1 = inlined_call_operand.hbm [shape: f32[160,160], index: 1, kind: input, shape index: {}]   ;;  %s729_s2 = inlined_call_operand.hbm [shape: f32[160,196], index: 2, kind: output, shape index: {}]  }
   0x1   :  { %8 = vsyncpa [#allocation6], 0 }
   0x2   :  { %9 = vsyncpa [#allocation4], 0  ;;  %s622_s9 = smov [#allocation2]   ;;  %s550_s13 = scalar_lea.hbm %s727_s0, 5120 }
   0x3   :  { %s15_s10 = sshll.u32 %s622_s9, 4  ;;  %p551_p0 = scmp.ne.s32.totalorder %s727_s0, %s550_s13  ;;  %s16_s10 = int_to_ptr.vmem [resolvable:$true] %s15_s10 }
   0x4   :  { %p554_p1 = scmp.lt.u32.totalorder %s550_s13, %s727_s0 }
   0x6   :  { %p556_p2 = pnand %p554_p1, %p551_p0 }
   0x8   :  { %559 = shalt.err (!%p556_p2)
}
   0x9   :  { %s560_s18 = scalar_lea.vmem %s16_s10, 5120  ;;  %p565_p4 = scmp.lt.s32.totalorder %s16_s10, %s16_s10 }
   0xa   :  { %p561_p3 = scmp.ne.s32.totalorder %s16_s10, %s560_s18  ;;  %p566_p5 = scmp.lt.s32.totalorder %s560_s18, %s560_s18 }
   0xc   :  { %p567_p6 = por %p566_p5, %p565_p4 }
   0xe   :  { %p568_p7 = pnand %p567_p6, %p561_p3 }
  0x10   :  { %571 = shalt.err (!%p568_p7)
}
  0x11   :  { %s623_s19 = smov 256   ;;  %s624_s20 = smov 16  }
  0x12   :  { %21 = dma.hbm_to_vmem [thread:$0]  %s727_s0, 5120, %s16_s10, [#allocation3], %s623_s19, %s623_s19, %s624_s20  }
  0x13   :  { %s625_s23 = smov [#allocation5]   ;;  %s572_s27 = scalar_lea.hbm %s728_s1, 5120 }
  0x14   :  { %s27_s24 = sshll.u32 %s625_s23, 4  ;;  %p573_p8 = scmp.ne.s32.totalorder %s728_s1, %s572_s27  ;;  %s28_s24 = int_to_ptr.vmem [resolvable:$true] %s27_s24 }
  0x15   :  { %p576_p9 = scmp.lt.u32.totalorder %s572_s27, %s728_s1 }
  0x17   :  { %p578_p10 = pnand %p576_p9, %p573_p8 }
  0x19   :  { %581 = shalt.err (!%p578_p10)
}
  0x1a   :  { %s582_s4 = scalar_lea.vmem %s28_s24, 5120  ;;  %p587_p12 = scmp.lt.s32.totalorder %s28_s24, %s28_s24 }
  0x1b   :  { %p583_p11 = scmp.ne.s32.totalorder %s28_s24, %s582_s4  ;;  %p588_p13 = scmp.lt.s32.totalorder %s582_s4, %s582_s4 }
  0x1d   :  { %p589_p0 = por %p588_p13, %p587_p12 }
  0x1f   :  { %p590_p1 = pnand %p589_p0, %p583_p11 }
  0x21   :  { %593 = shalt.err (!%p590_p1)
}
  0x22   :  { %33 = dma.hbm_to_vmem [thread:$0]  %s728_s1, 5120, %s28_s24, [#allocation6], %s623_s19, %s623_s19, %s624_s20  }
  0x23   :  { %616 = dma.done.wait [#allocation3], 5120  }
  0x24   :  { %617 = vsyncadd [#allocation3], 4294962176 }
  0x25   :  { %618 = dma.done.wait [#allocation6], 5120  }
  0x26   :  { %619 = vsyncadd [#allocation6], 4294962176  ;;  %v41_v0 = vld [vmem:[#allocation2 + $0x8] sm:$0xff]  ;;  %v43_v1 = vld [vmem:[#allocation2 + $0x18] sm:$0xff]  ;;  %vm160_vm0 = vcmask 261120   ;;  %vm407_vm1 = vcmask 556032  }
  0x27   :  { %v40_v2 = vld [vmem:[#allocation2] sm:$0xff]  ;;  %v81_v3 = vmax.f32 %v41_v0, 0.0  ;;  %v83_v4 = vmax.f32 %v43_v1, 0.0  ;;  %v42_v5 = vld [vmem:[#allocation2 + $0x10] sm:$0xff]  ;;  %v45_v7 = vld [vmem:[#allocation2 + $0x28] sm:$0xff]  ;;  %s626_s1 = smov [#allocation7]  }
  0x28   :  { %v80_v6 = vmax.f32 %v40_v2, 0.0  ;;  %v47_v8 = vld [vmem:[#allocation2 + $0x38] sm:$0xff]  ;;  %v82_v9 = vmax.f32 %v42_v5, 0.0  ;;  %v85_v10 = vmax.f32 %v45_v7, 0.0  ;;  %v44_v12 = vld [vmem:[#allocation2 + $0x20] sm:$0xff]  ;;  %v46_v13 = vld [vmem:[#allocation2 + $0x30] sm:$0xff] }
  0x29   :  { %v87_v11 = vmax.f32 %v47_v8, 0.0  ;;  %v49_v14 = vld [vmem:[#allocation2 + $0x48] sm:$0xff]  ;;  %v485_v15 = vpack.c.bf16 %v83_v4, %v81_v3  ;;  %v84_v16 = vmax.f32 %v44_v12, 0.0  ;;  %v86_v17 = vmax.f32 %v46_v13, 0.0  ;;  %v51_v18 = vld [vmem:[#allocation2 + $0x58] sm:$0xff]  ;;  %v48_v20 = vld [vmem:[#allocation2 + $0x40] sm:$0xff] }
  0x2a   :  { %v89_v19 = vmax.f32 %v49_v14, 0.0  ;;  %v50_v21 = vld [vmem:[#allocation2 + $0x50] sm:$0xff]  ;;  %v487_v22 = vpack.c.bf16 %v82_v9, %v80_v6  ;;  %v91_v24 = vmax.f32 %v51_v18, 0.0  ;;  %v53_v25 = vld [vmem:[#allocation2 + $0x68] sm:$0xff]  ;;  %v55_v26 = vld [vmem:[#allocation2 + $0x78] sm:$0xff]  ;;  %v88_v28 = vmax.f32 %v48_v20, 0.0 }
  0x2b   :  { %v489_v23 = vpack.c.bf16 %v87_v11, %v85_v10  ;;  %486 = vmatprep.subr.bf16.mxu0 %v485_v15  ;;  %525 = vmatprep.subr.bf16.mxu1 %v485_v15  ;;  %v491_v27 = vpack.c.bf16 %v86_v17, %v84_v16  ;;  %v90_v29 = vmax.f32 %v50_v21, 0.0  ;;  %v93_v31 = vmax.f32 %v53_v25, 0.0  ;;  %v52_v33 = vld [vmem:[#allocation2 + $0x60] sm:$0xff]  ;;  %v54_v34 = vld [vmem:[#allocation2 + $0x70] sm:$0xff]  ;;  %v57_v35 = vld [vmem:[#allocation2 + $0x88] sm:$0xff]  ;;  %s452_s6 = sshll.u32 %s626_s1, 4  ;;  %s453_s6 = int_to_ptr.vmem [resolvable:$true] %s452_s6 }
  0x2c   :  { %488 = vmatpush1.bf16.msra.mxu0 %v487_v22  ;;  %535 = vmatpush1.bf16.msra.mxu1 %v487_v22  ;;  %v493_v30 = vpack.c.bf16 %v91_v24, %v89_v19  ;;  %v95_v32 = vmax.f32 %v55_v26, 0.0  ;;  %v59_v36 = vld [vmem:[#allocation2 + $0x98] sm:$0xff]  ;;  %v92_v38 = vmax.f32 %v52_v33, 0.0  ;;  %v94_v39 = vmax.f32 %v54_v34, 0.0  ;;  %v56_v43 = vld [vmem:[#allocation2 + $0x80] sm:$0xff]  ;;  %v58_v44 = vld [vmem:[#allocation2 + $0x90] sm:$0xff]  ;;  %p599_p3 = scmp.lt.s32.totalorder %s453_s6, %s453_s6 }
  0x2d   :  { %490 = vmatprep.subr.bf16.mxu0 %v489_v23  ;;  %526 = vmatprep.subr.bf16.mxu1 %v489_v23  ;;  %v495_v37 = vpack.c.bf16 %v90_v29, %v88_v28  ;;  %v97_v41 = vmax.f32 %v57_v35, 0.0  ;;  %v99_v42 = vmax.f32 %v59_v36, 0.0  ;;  %v61_v45 = vld [vmem:[#allocation2 + $0xa8] sm:$0xff]  ;;  %v63_v46 = vld [vmem:[#allocation2 + $0xb8] sm:$0xff]  ;;  %v96_v50 = vmax.f32 %v56_v43, 0.0  ;;  %v60_v55 = vld [vmem:[#allocation2 + $0xa0] sm:$0xff] }
  0x2e   :  { %v497_v40 = vpack.c.bf16 %v95_v32, %v93_v31  ;;  %v121_v47 = vld [vmem:[#allocation5 + $0x8] sm:$0xff]  ;;  %v499_v49 = vpack.c.bf16 %v94_v39, %v92_v38  ;;  %v98_v51 = vmax.f32 %v58_v44, 0.0  ;;  %v101_v53 = vmax.f32 %v61_v45, 0.0  ;;  %v62_v56 = vld [vmem:[#allocation2 + $0xb0] sm:$0xff]  ;;  %v67_v58 = vld [vmem:[#allocation2 + $0xd8] sm:$0xff]  ;;  %s594_s7 = scalar_lea.vmem %s453_s6, 5120 }
  0x2f   :  { %v141_v48 = vld [vmem:[#allocation5 + $0xa8] sm:$0xff]  ;;  %v501_v52 = vpack.c.bf16 %v99_v42, %v97_v41  ;;  %v103_v54 = vmax.f32 %v63_v46, 0.0  ;;  %465 = vmatprep.mubr.msk.f32.mxu0 %vm160_vm0, %v121_v47  ;;  %v100_v60 = vmax.f32 %v60_v55, 0.0  ;;  %v102_v61 = vmax.f32 %v62_v56, 0.0  ;;  %v64_v1 = vld [vmem:[#allocation2 + $0xc0] sm:$0xff]  ;;  %v66_v2 = vld [vmem:[#allocation2 + $0xd0] sm:$0xff]  ;;  %p595_p2 = scmp.ne.s32.totalorder %s453_s6, %s594_s7  ;;  %p600_p4 = scmp.lt.s32.totalorder %s594_s7, %s594_s7 }
  0x30   :  { %492 = vmatpush1.bf16.msra.mxu0 %v491_v27  ;;  %536 = vmatpush1.bf16.msra.mxu1 %v491_v27  ;;  %v65_v57 = vld [vmem:[#allocation2 + $0xc8] sm:$0xff]  ;;  %v503_v59 = vpack.c.bf16 %v98_v51, %v96_v50  ;;  %v107_v0 = vmax.f32 %v67_v58, 0.0  ;;  %v71_v4 = vld [vmem:[#allocation2 + $0xf8] sm:$0xff]  ;;  %v104_v6 = vmax.f32 %v64_v1, 0.0  ;;  %v106_v7 = vmax.f32 %v66_v2, 0.0  ;;  %v68_v11 = vld [vmem:[#allocation2 + $0xe0] sm:$0xff] }
  0x31   :  { %494 = vmatprep.subr.bf16.mxu0 %v493_v30  ;;  %527 = vmatprep.subr.bf16.mxu1 %v493_v30  ;;  %v505_v62 = vpack.c.bf16 %v103_v54, %v101_v53  ;;  %v105_v63 = vmax.f32 %v65_v57, 0.0  ;;  %v69_v3 = vld [vmem:[#allocation2 + $0xe8] sm:$0xff]  ;;  %v507_v5 = vpack.c.bf16 %v102_v61, %v100_v60  ;;  %v111_v10 = vmax.f32 %v71_v4, 0.0  ;;  %v70_v12 = vld [vmem:[#allocation2 + $0xf0] sm:$0xff]  ;;  %v75_v14 = vld [vmem:[#allocation2 + $0x118] sm:$0xff]  ;;  %p601_p5 = por %p600_p4, %p599_p3 }
  0x32   :  { %475 = vmatprep.mubr.msk.f32.mxu1 %vm160_vm0, %v141_v48  ;;  %v109_v9 = vmax.f32 %v69_v3, 0.0  ;;  %v73_v13 = vld [vmem:[#allocation2 + $0x108] sm:$0xff]  ;;  %v511_v15 = vpack.c.bf16 %v106_v7, %v104_v6  ;;  %v108_v16 = vmax.f32 %v68_v11, 0.0  ;;  %v110_v17 = vmax.f32 %v70_v12, 0.0  ;;  %v72_v21 = vld [vmem:[#allocation2 + $0x100] sm:$0xff]  ;;  %v74_v22 = vld [vmem:[#allocation2 + $0x110] sm:$0xff] }
  0x33   :  { %v509_v8 = vpack.c.bf16 %v107_v0, %v105_v63  ;;  %v113_v19 = vmax.f32 %v73_v13, 0.0  ;;  %v115_v20 = vmax.f32 %v75_v14, 0.0  ;;  %v77_v23 = vld [vmem:[#allocation2 + $0x128] sm:$0xff]  ;;  %v79_v24 = vld [vmem:[#allocation2 + $0x138] sm:$0xff]  ;;  %v112_v26 = vmax.f32 %v72_v21, 0.0  ;;  %v76_v31 = vld [vmem:[#allocation2 + $0x120] sm:$0xff]  ;;  %p602_p6 = pnand %p601_p5, %p595_p2 }
  0x34   :  { %496 = vmatpush1.bf16.msra.mxu0 %v495_v37  ;;  %537 = vmatpush1.bf16.msra.mxu1 %v495_v37  ;;  %v513_v18 = vpack.c.bf16 %v111_v10, %v109_v9  ;;  %v515_v25 = vpack.c.bf16 %v110_v17, %v108_v16  ;;  %v114_v27 = vmax.f32 %v74_v22, 0.0  ;;  %v117_v29 = vmax.f32 %v77_v23, 0.0  ;;  %v78_v32 = vld [vmem:[#allocation2 + $0x130] sm:$0xff]  ;;  %v120_v38 = vld [vmem:[#allocation5] sm:$0xff]  ;;  %v143_v41 = vld [vmem:[#allocation5 + $0xb8] sm:$0xff] }
  0x35   :  { %498 = vmatprep.subr.bf16.mxu0 %v497_v40  ;;  %528 = vmatprep.subr.bf16.mxu1 %v497_v40  ;;  %v517_v28 = vpack.c.bf16 %v115_v20, %v113_v19  ;;  %v119_v30 = vmax.f32 %v79_v24, 0.0  ;;  %v116_v34 = vmax.f32 %v76_v31, 0.0  ;;  %v118_v35 = vmax.f32 %v78_v32, 0.0  ;;  %v140_v39 = vld [vmem:[#allocation5 + $0xa0] sm:$0xff]  ;;  %v123_v40 = vld [vmem:[#allocation5 + $0x18] sm:$0xff]  ;;  %v122_v42 = vld [vmem:[#allocation5 + $0x10] sm:$0xff] }
  0x36   :  { %v519_v33 = vpack.c.bf16 %v114_v27, %v112_v26  ;;  %v142_v43 = vld [vmem:[#allocation5 + $0xb0] sm:$0xff]  ;;  %v125_v44 = vld [vmem:[#allocation5 + $0x28] sm:$0xff]  ;;  %v124_v46 = vld [vmem:[#allocation5 + $0x20] sm:$0xff] }
  0x37   :  { %v521_v36 = vpack.c.bf16 %v119_v30, %v117_v29  ;;  %v523_v37 = vpack.c.bf16 %v118_v35, %v116_v34  ;;  %v145_v45 = vld [vmem:[#allocation5 + $0xc8] sm:$0xff]  ;;  %v144_v47 = vld [vmem:[#allocation5 + $0xc0] sm:$0xff]  ;;  %v127_v48 = vld [vmem:[#allocation5 + $0x38] sm:$0xff] }
  0x38   :  { %500 = vmatpush1.bf16.msra.mxu0 %v499_v49  ;;  %538 = vmatpush1.bf16.msra.mxu1 %v499_v49  ;;  %v147_v49 = vld [vmem:[#allocation5 + $0xd8] sm:$0xff]  ;;  %v126_v50 = vld [vmem:[#allocation5 + $0x30] sm:$0xff]  ;;  %v149_v53 = vld [vmem:[#allocation5 + $0xe8] sm:$0xff] }
  0x39   :  { %502 = vmatprep.subr.bf16.mxu0 %v501_v52  ;;  %529 = vmatprep.subr.bf16.mxu1 %v501_v52  ;;  %v146_v51 = vld [vmem:[#allocation5 + $0xd0] sm:$0xff]  ;;  %v129_v52 = vld [vmem:[#allocation5 + $0x48] sm:$0xff]  ;;  %v128_v54 = vld [vmem:[#allocation5 + $0x40] sm:$0xff] }
  0x3a   :  { %v148_v55 = vld [vmem:[#allocation5 + $0xe0] sm:$0xff]  ;;  %v131_v56 = vld [vmem:[#allocation5 + $0x58] sm:$0xff]  ;;  %v130_v58 = vld [vmem:[#allocation5 + $0x50] sm:$0xff] }
  0x3b   :  { %v151_v57 = vld [vmem:[#allocation5 + $0xf8] sm:$0xff]  ;;  %v133_v60 = vld [vmem:[#allocation5 + $0x68] sm:$0xff]  ;;  %v152_v63 = vld [vmem:[#allocation5 + $0x100] sm:$0xff] }
  0x3c   :  { %504 = vmatpush1.bf16.msra.mxu0 %v503_v59  ;;  %539 = vmatpush1.bf16.msra.mxu1 %v503_v59  ;;  %v150_v59 = vld [vmem:[#allocation5 + $0xf0] sm:$0xff]  ;;  %v153_v61 = vld [vmem:[#allocation5 + $0x108] sm:$0xff]  ;;  %v135_v0 = vld [vmem:[#allocation5 + $0x78] sm:$0xff] }
  0x3d   :  { %506 = vmatprep.subr.bf16.mxu0 %v505_v62  ;;  %530 = vmatprep.subr.bf16.mxu1 %v505_v62  ;;  %v132_v62 = vld [vmem:[#allocation5 + $0x60] sm:$0xff]  ;;  %v155_v1 = vld [vmem:[#allocation5 + $0x118] sm:$0xff]  ;;  %v134_v2 = vld [vmem:[#allocation5 + $0x70] sm:$0xff] }
  0x3e   :  { %v154_v3 = vld [vmem:[#allocation5 + $0x110] sm:$0xff]  ;;  %v137_v4 = vld [vmem:[#allocation5 + $0x88] sm:$0xff]  ;;  %v136_v6 = vld [vmem:[#allocation5 + $0x80] sm:$0xff] }
  0x3f   :  { %v156_v7 = vld [vmem:[#allocation5 + $0x120] sm:$0xff]  ;;  %v159_v9 = vld [vmem:[#allocation5 + $0x138] sm:$0xff]  ;;  %v138_v10 = vld [vmem:[#allocation5 + $0x90] sm:$0xff] }
  0x40   :  { %508 = vmatpush1.bf16.msra.mxu0 %v507_v5  ;;  %540 = vmatpush1.bf16.msra.mxu1 %v507_v5  ;;  %v157_v5 = vld [vmem:[#allocation5 + $0x128] sm:$0xff]  ;;  %v158_v11 = vld [vmem:[#allocation5 + $0x130] sm:$0xff] }
  0x41   :  { %510 = vmatprep.subr.bf16.mxu0 %v509_v8  ;;  %531 = vmatprep.subr.bf16.mxu1 %v509_v8  ;;  %v139_v8 = vld [vmem:[#allocation5 + $0x98] sm:$0xff] }
  0x44   :  { %512 = vmatpush1.bf16.msra.mxu0 %v511_v15  ;;  %541 = vmatpush1.bf16.msra.mxu1 %v511_v15 }
  0x45   :  { %514 = vmatprep.subr.bf16.mxu0 %v513_v18  ;;  %532 = vmatprep.subr.bf16.mxu1 %v513_v18 }
  0x48   :  { %516 = vmatpush1.bf16.msra.mxu0 %v515_v25  ;;  %542 = vmatpush1.bf16.msra.mxu1 %v515_v25 }
  0x49   :  { %518 = vmatprep.subr.bf16.mxu0 %v517_v28  ;;  %533 = vmatprep.subr.bf16.mxu1 %v517_v28 }
  0x4c   :  { %520 = vmatpush1.bf16.msra.mxu0 %v519_v33  ;;  %543 = vmatpush1.bf16.msra.mxu1 %v519_v33 }
  0x4d   :  { %522 = vmatprep.subr.bf16.mxu0 %v521_v36  ;;  %534 = vmatprep.subr.bf16.mxu1 %v521_v36 }
  0x50   :  { %524 = vmatpush1.bf16.msra.mxu0 %v523_v37  ;;  %544 = vmatpush1.bf16.msra.mxu1 %v523_v37 }
  0x53   :  { %286 = vmatmul.mubr.f32.vlgmr.msra.gmra.mrb[0].mxu0 %v120_v38  ;;  %346 = vmatmul.mubr.f32.vlgmr.msra.gmra.mrb[0].mxu1 %v140_v39 }
  0x54   :  { %466 = vmatprep.mubr.msk.f32.mxu0 %vm160_vm0, %v123_v40  ;;  %476 = vmatprep.mubr.msk.f32.mxu1 %vm160_vm0, %v143_v41 }
  0x57   :  { %292 = vmatmul.mubr.f32.gmra.mrb[2].mxu0 %v122_v42  ;;  %352 = vmatmul.mubr.f32.gmra.mrb[2].mxu1 %v142_v43 }
  0x58   :  { %467 = vmatprep.mubr.msk.f32.mxu0 %vm160_vm0, %v125_v44  ;;  %477 = vmatprep.mubr.msk.f32.mxu1 %vm160_vm0, %v145_v45 }
  0x5b   :  { %298 = vmatmul.mubr.f32.gmra.mrb[4].mxu0 %v124_v46  ;;  %358 = vmatmul.mubr.f32.gmra.mrb[4].mxu1 %v144_v47 }
  0x5c   :  { %468 = vmatprep.mubr.msk.f32.mxu0 %vm160_vm0, %v127_v48  ;;  %478 = vmatprep.mubr.msk.f32.mxu1 %vm160_vm0, %v147_v49 }
  0x5f   :  { %304 = vmatmul.mubr.f32.gmra.mrb[6].mxu0 %v126_v50  ;;  %364 = vmatmul.mubr.f32.gmra.mrb[6].mxu1 %v146_v51 }
  0x60   :  { %469 = vmatprep.mubr.msk.f32.mxu0 %vm160_vm0, %v129_v52  ;;  %479 = vmatprep.mubr.msk.f32.mxu1 %vm160_vm0, %v149_v53 }
  0x63   :  { %310 = vmatmul.mubr.f32.gmra.mrb[8].mxu0 %v128_v54  ;;  %370 = vmatmul.mubr.f32.gmra.mrb[8].mxu1 %v148_v55 }
  0x64   :  { %470 = vmatprep.mubr.msk.f32.mxu0 %vm160_vm0, %v131_v56  ;;  %480 = vmatprep.mubr.msk.f32.mxu1 %vm160_vm0, %v151_v57 }
  0x67   :  { %316 = vmatmul.mubr.f32.gmra.mrb[10].mxu0 %v130_v58  ;;  %376 = vmatmul.mubr.f32.gmra.mrb[10].mxu1 %v150_v59 }
  0x68   :  { %471 = vmatprep.mubr.msk.f32.mxu0 %vm160_vm0, %v133_v60  ;;  %481 = vmatprep.mubr.msk.f32.mxu1 %vm160_vm0, %v153_v61 }
  0x6b   :  { %322 = vmatmul.mubr.f32.gmra.mrb[12].mxu0 %v132_v62  ;;  %382 = vmatmul.mubr.f32.gmra.mrb[12].mxu1 %v152_v63 }
  0x6c   :  { %472 = vmatprep.mubr.msk.f32.mxu0 %vm160_vm0, %v135_v0  ;;  %482 = vmatprep.mubr.msk.f32.mxu1 %vm160_vm0, %v155_v1 }
  0x6f   :  { %328 = vmatmul.mubr.f32.gmra.mrb[14].mxu0 %v134_v2  ;;  %388 = vmatmul.mubr.f32.gmra.mrb[14].mxu1 %v154_v3 }
  0x70   :  { %473 = vmatprep.mubr.msk.f32.mxu0 %vm160_vm0, %v137_v4  ;;  %483 = vmatprep.mubr.msk.f32.mxu1 %vm160_vm0, %v157_v5 }
  0x73   :  { %334 = vmatmul.mubr.f32.gmra.mrb[16].mxu0 %v136_v6  ;;  %394 = vmatmul.mubr.f32.gmra.mrb[16].mxu1 %v156_v7 }
  0x74   :  { %474 = vmatprep.mubr.msk.f32.mxu0 %vm160_vm0, %v139_v8  ;;  %484 = vmatprep.mubr.msk.f32.mxu1 %vm160_vm0, %v159_v9 }
  0x77   :  { %340 = vmatmul.mubr.f32.gmra.mrb[18].mxu0 %v138_v10  ;;  %400 = vmatmul.mubr.f32.gmra.mrb[18].mxu1 %v158_v11 }
 0x126   :  { %v287_v12 = vpop.f32.mrb[0].mxu0  ;;  %v347_v13 = vpop.f32.mrb[0].mxu1 }
 0x127   :  { %406 = vst [vmem:[#allocation7] sm:$0xff] %v287_v12  ;;  %427 = vst [vmem:[#allocation7 + $0xa0] sm:$0xff] %v347_v13  ;;  %v289_v14 = vpop.f32.mrb[1].mxu0  ;;  %v349_v15 = vpop.f32.mrb[1].mxu1 }
 0x128   :  { %408 = vst.msk [vmem:[#allocation7 + $0x8] sm:$0xff] %vm407_vm1, %v289_v14  ;;  %428 = vst.msk [vmem:[#allocation7 + $0xa8] sm:$0xff] %vm407_vm1, %v349_v15 }
 0x12a   :  { %v293_v16 = vpop.f32.mrb[2].mxu0  ;;  %v353_v17 = vpop.f32.mrb[2].mxu1 }
 0x12b   :  { %409 = vst [vmem:[#allocation7 + $0x10] sm:$0xff] %v293_v16  ;;  %429 = vst [vmem:[#allocation7 + $0xb0] sm:$0xff] %v353_v17  ;;  %v295_v18 = vpop.f32.mrb[3].mxu0  ;;  %v355_v19 = vpop.f32.mrb[3].mxu1 }
 0x12c   :  { %410 = vst.msk [vmem:[#allocation7 + $0x18] sm:$0xff] %vm407_vm1, %v295_v18  ;;  %430 = vst.msk [vmem:[#allocation7 + $0xb8] sm:$0xff] %vm407_vm1, %v355_v19 }
 0x12e   :  { %v299_v20 = vpop.f32.mrb[4].mxu0  ;;  %v359_v21 = vpop.f32.mrb[4].mxu1 }
 0x12f   :  { %411 = vst [vmem:[#allocation7 + $0x20] sm:$0xff] %v299_v20  ;;  %431 = vst [vmem:[#allocation7 + $0xc0] sm:$0xff] %v359_v21  ;;  %v301_v22 = vpop.f32.mrb[5].mxu0  ;;  %v361_v23 = vpop.f32.mrb[5].mxu1 }
 0x130   :  { %412 = vst.msk [vmem:[#allocation7 + $0x28] sm:$0xff] %vm407_vm1, %v301_v22  ;;  %432 = vst.msk [vmem:[#allocation7 + $0xc8] sm:$0xff] %vm407_vm1, %v361_v23 }
 0x132   :  { %v305_v24 = vpop.f32.mrb[6].mxu0  ;;  %v365_v25 = vpop.f32.mrb[6].mxu1 }
 0x133   :  { %413 = vst [vmem:[#allocation7 + $0x30] sm:$0xff] %v305_v24  ;;  %433 = vst [vmem:[#allocation7 + $0xd0] sm:$0xff] %v365_v25  ;;  %v307_v26 = vpop.f32.mrb[7].mxu0  ;;  %v367_v27 = vpop.f32.mrb[7].mxu1 }
 0x134   :  { %414 = vst.msk [vmem:[#allocation7 + $0x38] sm:$0xff] %vm407_vm1, %v307_v26  ;;  %434 = vst.msk [vmem:[#allocation7 + $0xd8] sm:$0xff] %vm407_vm1, %v367_v27 }
 0x136   :  { %v311_v28 = vpop.f32.mrb[8].mxu0  ;;  %v371_v29 = vpop.f32.mrb[8].mxu1 }
 0x137   :  { %415 = vst [vmem:[#allocation7 + $0x40] sm:$0xff] %v311_v28  ;;  %435 = vst [vmem:[#allocation7 + $0xe0] sm:$0xff] %v371_v29  ;;  %v313_v30 = vpop.f32.mrb[9].mxu0  ;;  %v373_v31 = vpop.f32.mrb[9].mxu1 }
 0x138   :  { %416 = vst.msk [vmem:[#allocation7 + $0x48] sm:$0xff] %vm407_vm1, %v313_v30  ;;  %436 = vst.msk [vmem:[#allocation7 + $0xe8] sm:$0xff] %vm407_vm1, %v373_v31 }
 0x13a   :  { %v317_v32 = vpop.f32.mrb[10].mxu0  ;;  %v377_v33 = vpop.f32.mrb[10].mxu1 }
 0x13b   :  { %417 = vst [vmem:[#allocation7 + $0x50] sm:$0xff] %v317_v32  ;;  %437 = vst [vmem:[#allocation7 + $0xf0] sm:$0xff] %v377_v33  ;;  %v319_v34 = vpop.f32.mrb[11].mxu0  ;;  %v379_v35 = vpop.f32.mrb[11].mxu1 }
 0x13c   :  { %418 = vst.msk [vmem:[#allocation7 + $0x58] sm:$0xff] %vm407_vm1, %v319_v34  ;;  %438 = vst.msk [vmem:[#allocation7 + $0xf8] sm:$0xff] %vm407_vm1, %v379_v35 }
 0x13e   :  { %v323_v36 = vpop.f32.mrb[12].mxu0  ;;  %v383_v37 = vpop.f32.mrb[12].mxu1 }
 0x13f   :  { %419 = vst [vmem:[#allocation7 + $0x60] sm:$0xff] %v323_v36  ;;  %439 = vst [vmem:[#allocation7 + $0x100] sm:$0xff] %v383_v37  ;;  %v325_v38 = vpop.f32.mrb[13].mxu0  ;;  %v385_v39 = vpop.f32.mrb[13].mxu1 }
 0x140   :  { %420 = vst.msk [vmem:[#allocation7 + $0x68] sm:$0xff] %vm407_vm1, %v325_v38  ;;  %440 = vst.msk [vmem:[#allocation7 + $0x108] sm:$0xff] %vm407_vm1, %v385_v39 }
 0x142   :  { %v329_v40 = vpop.f32.mrb[14].mxu0  ;;  %v389_v41 = vpop.f32.mrb[14].mxu1 }
 0x143   :  { %421 = vst [vmem:[#allocation7 + $0x70] sm:$0xff] %v329_v40  ;;  %441 = vst [vmem:[#allocation7 + $0x110] sm:$0xff] %v389_v41  ;;  %v331_v42 = vpop.f32.mrb[15].mxu0  ;;  %v391_v43 = vpop.f32.mrb[15].mxu1 }
 0x144   :  { %422 = vst.msk [vmem:[#allocation7 + $0x78] sm:$0xff] %vm407_vm1, %v331_v42  ;;  %442 = vst.msk [vmem:[#allocation7 + $0x118] sm:$0xff] %vm407_vm1, %v391_v43 }
 0x146   :  { %v335_v44 = vpop.f32.mrb[16].mxu0  ;;  %v395_v45 = vpop.f32.mrb[16].mxu1 }
 0x147   :  { %423 = vst [vmem:[#allocation7 + $0x80] sm:$0xff] %v335_v44  ;;  %443 = vst [vmem:[#allocation7 + $0x120] sm:$0xff] %v395_v45  ;;  %v337_v46 = vpop.f32.mrb[17].mxu0  ;;  %v397_v47 = vpop.f32.mrb[17].mxu1 }
 0x148   :  { %424 = vst.msk [vmem:[#allocation7 + $0x88] sm:$0xff] %vm407_vm1, %v337_v46  ;;  %444 = vst.msk [vmem:[#allocation7 + $0x128] sm:$0xff] %vm407_vm1, %v397_v47 }
 0x14a   :  { %v341_v48 = vpop.f32.mrb[18].mxu0  ;;  %v401_v49 = vpop.f32.mrb[18].mxu1 }
 0x14b   :  { %425 = vst [vmem:[#allocation7 + $0x90] sm:$0xff] %v341_v48  ;;  %445 = vst [vmem:[#allocation7 + $0x130] sm:$0xff] %v401_v49  ;;  %v343_v50 = vpop.f32.mrb[19].mxu0  ;;  %v403_v51 = vpop.f32.mrb[19].mxu1 }
 0x14c   :  { %426 = vst.msk [vmem:[#allocation7 + $0x98] sm:$0xff] %vm407_vm1, %v343_v50  ;;  %446 = vst.msk [vmem:[#allocation7 + $0x138] sm:$0xff] %vm407_vm1, %v403_v51 }
 0x14d   :  { %605 = shalt.err (!%p602_p6)
}
 0x14e   :  { %s606_s10 = scalar_lea.hbm %s729_s2, 5120 }
 0x14f   :  { %p607_p7 = scmp.ne.s32.totalorder %s729_s2, %s606_s10  ;;  %p610_p8 = scmp.lt.u32.totalorder %s606_s10, %s729_s2 }
 0x151   :  { %p612_p9 = pnand %p610_p8, %p607_p7 }
 0x153   :  { %615 = shalt.err (!%p612_p9)
}
 0x154   :  { %458 = dma.vmem_to_hbm [thread:$0]  %s453_s6, 5120, %s729_s2, [#allocation4], %s623_s19, %s623_s19, %s624_s20  }
 0x155   :  { %620 = dma.done.wait [#allocation4], 5120  }
 0x156   :  { %621 = vsyncadd [#allocation4], 4294962176 }
 0x157   :  { %462 = vsyncpa [#allocation3], 1 }
 0x158   :  { %463 = vsyncpa [#allocation6], 1 }
 0x159   :  { %464 = vsyncpa [#allocation4], 1 }

</bundles_post_ra>
